<compile_context>
chip_gen: v7x
topology: tpu7x:2x2x1
jax: 0.10.0
libtpu: 0.0.40
codegen_flags: <defaults>
</compile_context>

<pallas_src>
import functools

import jax
import jax.numpy as jnp
from jax.experimental import pallas as pl
from jax.experimental.pallas import tpu as pltpu


def simple_kernel(x_ref, y_ref, w_ref, b_ref, out_ref, *, Bx, By):
    """Fused, folded forward for both branches (single invocation, no grid).

    x_ref  : (Bx, S, D)  raw x batch in VMEM
    y_ref  : (By, S, D)  raw y batch in VMEM
    w_ref  : (D, O)      folded weight  w1 @ w2          (folded at init time)
    b_ref  : (1, O)      folded bias    2 * (b1 @ w2 + b2)
    out_ref: (S, O)
    """
    w = w_ref[...]

    def branch_max(ref, B):
        # Per-batch-element (S, D) @ (D, O) dot with a running max.  Each ref[b]
        # is a leading-dim slice (tile-aligned, no sublane shifts); only the
        # (S, O) accumulator stays live, so nothing spills.
        m = jnp.dot(ref[0], w, preferred_element_type=jnp.float32)
        for b in range(1, B):
            m = jnp.maximum(
                m, jnp.dot(ref[b], w, preferred_element_type=jnp.float32))
        return m

    # Bias hoisted out of the max (max(z@W + b) = max(z@W) + b); b_ref already
    # holds 2*b, so a single broadcast-add finishes both branches.
    out_ref[...] = branch_max(x_ref, Bx) + branch_max(y_ref, By) + b_ref[...]


def fold_params(w1, b1, w2, b2):
    """Fold lin1/lin2 once, outside the hot path (weights are static).

    lin2(lin1(t)) = (t @ w1 + b1) @ w2 + b2 = t @ (w1 @ w2) + (b1 @ w2 + b2)
    The bias is pre-scaled by 2 because both branches add it after the max.
    Weights are stored pre-transposed (in_features, out_features), i.e.
    nn.Linear weight.T, so lin(x) == x @ w + b.
    """
    w_folded = jnp.dot(w1, w2)                                     # (D, O)
    b_folded_x2 = (2.0 * (jnp.dot(b1, w2) + b2)).reshape(1, -1)    # (1, O)
    return w_folded, b_folded_x2


def simple_forward(x, y, w_folded, b_folded_x2):
    """x: (Bx, S, D), y: (By, S, D); w_folded: (D, O), b_folded_x2: (1, O)."""
    Bx, S, D = x.shape
    By = y.shape[0]
    O = w_folded.shape[1]

    vmem = pl.BlockSpec(memory_space=pltpu.MemorySpace.VMEM)
    kernel = functools.partial(simple_kernel, Bx=Bx, By=By)

    flops = 2 * (Bx + By) * S * D * O
    bytes_accessed = 4 * (x.size + y.size + w_folded.size
                          + b_folded_x2.size + S * O)

    return pl.pallas_call(
        kernel,
        out_shape=jax.ShapeDtypeStruct((S, O), jnp.float32),
        in_specs=[vmem, vmem, vmem, vmem],
        out_specs=vmem,
        cost_estimate=pl.CostEstimate(
            flops=flops, transcendentals=0, bytes_accessed=bytes_accessed),
    )(x, y, w_folded, b_folded_x2)


def reference_forward(x, y, w1, b1, w2, b2):
    def branch(t):
        h = jnp.einsum("bsd,dh->bsh", t, w1) + b1
        o = jnp.einsum("bsh,ho->bso", h, w2) + b2
        return jnp.max(o, axis=0)
    return branch(x) + branch(y)


if __name__ == "__main__":
    input_dim, hid_dim, out_dim = 10, 32, 16
    Bx, By, S = 4, 5, 50

    key = jax.random.PRNGKey(0)
    kx, ky, kw1, kb1, kw2, kb2 = jax.random.split(key, 6)

    x = jax.random.normal(kx, (Bx, S, input_dim), dtype=jnp.float32)
    y = jax.random.normal(ky, (By, S, input_dim), dtype=jnp.float32)

    # Deterministic parameter init (shapes follow nn.Linear; stored transposed).
    w1 = jax.random.normal(kw1, (input_dim, hid_dim), dtype=jnp.float32) * 0.1
    b1 = jax.random.normal(kb1, (hid_dim,), dtype=jnp.float32) * 0.1
    w2 = jax.random.normal(kw2, (hid_dim, out_dim), dtype=jnp.float32) * 0.1
    b2 = jax.random.normal(kb2, (out_dim,), dtype=jnp.float32) * 0.1

    # Fold once at init time (outside the hot path).
    w_folded, b_folded_x2 = fold_params(w1, b1, w2, b2)
    w_folded = jax.block_until_ready(w_folded)
    b_folded_x2 = jax.block_until_ready(b_folded_x2)

    out = simple_forward(x, y, w_folded, b_folded_x2)
    out = jax.block_until_ready(out)

    ref = reference_forward(x, y, w1, b1, w2, b2)
    assert out.shape == (S, out_dim)
    # f32 weight folding reorders accumulation vs the reference -> tolerance, not bitwise.
    assert jnp.allclose(out, ref, atol=1e-4, rtol=1e-4), "mismatch vs JAX reference"

    print("KERNEL_OK")
</pallas_src>

<mosaic_0001>
module attributes {stable_mosaic.version = 11 : i64} {
  func.func @simple_kernel(%arg0: memref<4x50x10xf32, #tpu.memory_space<vmem>>, %arg1: memref<5x50x10xf32, #tpu.memory_space<vmem>>, %arg2: memref<10x16xf32, #tpu.memory_space<vmem>>, %arg3: memref<1x16xf32, #tpu.memory_space<vmem>>, %arg4: memref<50x16xf32, #tpu.memory_space<vmem>>) attributes {dimension_semantics = [], scalar_prefetch = 0 : i64, scratch_operands = 0 : i64, tpu.core_type = #tpu.core_type<tc>} {
    %c0 = arith.constant 0 : index
    %c0_0 = arith.constant 0 : index
    %0 = vector.load %arg2[%c0, %c0_0] : memref<10x16xf32, #tpu.memory_space<vmem>>, vector<10x16xf32>
    %c0_1 = arith.constant 0 : index
    %c0_2 = arith.constant 0 : index
    %c0_3 = arith.constant 0 : index
    %1 = vector.load %arg0[%c0_1, %c0_2, %c0_3] : memref<4x50x10xf32, #tpu.memory_space<vmem>>, vector<1x50x10xf32>
    %2 = vector.shape_cast %1 : vector<1x50x10xf32> to vector<50x10xf32>
    %cst = arith.constant dense<0.000000e+00> : vector<50x16xf32>
    %3 = tpu.matmul %2, %0, %cst {dimension_numbers = #tpu.dot_dimension_numbers<[1], [0], [0], [1], [0, 0, 1, 1], [], []>} : vector<50x10xf32>, vector<10x16xf32>, vector<50x16xf32> -> vector<50x16xf32>
    %c1 = arith.constant 1 : index
    %c0_4 = arith.constant 0 : index
    %c0_5 = arith.constant 0 : index
    %4 = vector.load %arg0[%c1, %c0_4, %c0_5] : memref<4x50x10xf32, #tpu.memory_space<vmem>>, vector<1x50x10xf32>
    %5 = vector.shape_cast %4 : vector<1x50x10xf32> to vector<50x10xf32>
    %cst_6 = arith.constant dense<0.000000e+00> : vector<50x16xf32>
    %6 = tpu.matmul %5, %0, %cst_6 {dimension_numbers = #tpu.dot_dimension_numbers<[1], [0], [0], [1], [0, 0, 1, 1], [], []>} : vector<50x10xf32>, vector<10x16xf32>, vector<50x16xf32> -> vector<50x16xf32>
    %7 = arith.maximumf %3, %6 : vector<50x16xf32>
    %c2 = arith.constant 2 : index
    %c0_7 = arith.constant 0 : index
    %c0_8 = arith.constant 0 : index
    %8 = vector.load %arg0[%c2, %c0_7, %c0_8] : memref<4x50x10xf32, #tpu.memory_space<vmem>>, vector<1x50x10xf32>
    %9 = vector.shape_cast %8 : vector<1x50x10xf32> to vector<50x10xf32>
    %cst_9 = arith.constant dense<0.000000e+00> : vector<50x16xf32>
    %10 = tpu.matmul %9, %0, %cst_9 {dimension_numbers = #tpu.dot_dimension_numbers<[1], [0], [0], [1], [0, 0, 1, 1], [], []>} : vector<50x10xf32>, vector<10x16xf32>, vector<50x16xf32> -> vector<50x16xf32>
    %11 = arith.maximumf %7, %10 : vector<50x16xf32>
    %c3 = arith.constant 3 : index
    %c0_10 = arith.constant 0 : index
    %c0_11 = arith.constant 0 : index
    %12 = vector.load %arg0[%c3, %c0_10, %c0_11] : memref<4x50x10xf32, #tpu.memory_space<vmem>>, vector<1x50x10xf32>
    %13 = vector.shape_cast %12 : vector<1x50x10xf32> to vector<50x10xf32>
    %cst_12 = arith.constant dense<0.000000e+00> : vector<50x16xf32>
    %14 = tpu.matmul %13, %0, %cst_12 {dimension_numbers = #tpu.dot_dimension_numbers<[1], [0], [0], [1], [0, 0, 1, 1], [], []>} : vector<50x10xf32>, vector<10x16xf32>, vector<50x16xf32> -> vector<50x16xf32>
    %15 = arith.maximumf %11, %14 : vector<50x16xf32>
    %c0_13 = arith.constant 0 : index
    %c0_14 = arith.constant 0 : index
    %c0_15 = arith.constant 0 : index
    %16 = vector.load %arg1[%c0_13, %c0_14, %c0_15] : memref<5x50x10xf32, #tpu.memory_space<vmem>>, vector<1x50x10xf32>
    %17 = vector.shape_cast %16 : vector<1x50x10xf32> to vector<50x10xf32>
    %cst_16 = arith.constant dense<0.000000e+00> : vector<50x16xf32>
    %18 = tpu.matmul %17, %0, %cst_16 {dimension_numbers = #tpu.dot_dimension_numbers<[1], [0], [0], [1], [0, 0, 1, 1], [], []>} : vector<50x10xf32>, vector<10x16xf32>, vector<50x16xf32> -> vector<50x16xf32>
    %c1_17 = arith.constant 1 : index
    %c0_18 = arith.constant 0 : index
    %c0_19 = arith.constant 0 : index
    %19 = vector.load %arg1[%c1_17, %c0_18, %c0_19] : memref<5x50x10xf32, #tpu.memory_space<vmem>>, vector<1x50x10xf32>
    %20 = vector.shape_cast %19 : vector<1x50x10xf32> to vector<50x10xf32>
    %cst_20 = arith.constant dense<0.000000e+00> : vector<50x16xf32>
    %21 = tpu.matmul %20, %0, %cst_20 {dimension_numbers = #tpu.dot_dimension_numbers<[1], [0], [0], [1], [0, 0, 1, 1], [], []>} : vector<50x10xf32>, vector<10x16xf32>, vector<50x16xf32> -> vector<50x16xf32>
    %22 = arith.maximumf %18, %21 : vector<50x16xf32>
    %c2_21 = arith.constant 2 : index
    %c0_22 = arith.constant 0 : index
    %c0_23 = arith.constant 0 : index
    %23 = vector.load %arg1[%c2_21, %c0_22, %c0_23] : memref<5x50x10xf32, #tpu.memory_space<vmem>>, vector<1x50x10xf32>
    %24 = vector.shape_cast %23 : vector<1x50x10xf32> to vector<50x10xf32>
    %cst_24 = arith.constant dense<0.000000e+00> : vector<50x16xf32>
    %25 = tpu.matmul %24, %0, %cst_24 {dimension_numbers = #tpu.dot_dimension_numbers<[1], [0], [0], [1], [0, 0, 1, 1], [], []>} : vector<50x10xf32>, vector<10x16xf32>, vector<50x16xf32> -> vector<50x16xf32>
    %26 = arith.maximumf %22, %25 : vector<50x16xf32>
    %c3_25 = arith.constant 3 : index
    %c0_26 = arith.constant 0 : index
    %c0_27 = arith.constant 0 : index
    %27 = vector.load %arg1[%c3_25, %c0_26, %c0_27] : memref<5x50x10xf32, #tpu.memory_space<vmem>>, vector<1x50x10xf32>
    %28 = vector.shape_cast %27 : vector<1x50x10xf32> to vector<50x10xf32>
    %cst_28 = arith.constant dense<0.000000e+00> : vector<50x16xf32>
    %29 = tpu.matmul %28, %0, %cst_28 {dimension_numbers = #tpu.dot_dimension_numbers<[1], [0], [0], [1], [0, 0, 1, 1], [], []>} : vector<50x10xf32>, vector<10x16xf32>, vector<50x16xf32> -> vector<50x16xf32>
    %30 = arith.maximumf %26, %29 : vector<50x16xf32>
    %c4 = arith.constant 4 : index
    %c0_29 = arith.constant 0 : index
    %c0_30 = arith.constant 0 : index
    %31 = vector.load %arg1[%c4, %c0_29, %c0_30] : memref<5x50x10xf32, #tpu.memory_space<vmem>>, vector<1x50x10xf32>
    %32 = vector.shape_cast %31 : vector<1x50x10xf32> to vector<50x10xf32>
    %cst_31 = arith.constant dense<0.000000e+00> : vector<50x16xf32>
    %33 = tpu.matmul %32, %0, %cst_31 {dimension_numbers = #tpu.dot_dimension_numbers<[1], [0], [0], [1], [0, 0, 1, 1], [], []>} : vector<50x10xf32>, vector<10x16xf32>, vector<50x16xf32> -> vector<50x16xf32>
    %34 = arith.maximumf %30, %33 : vector<50x16xf32>
    %35 = arith.addf %15, %34 : vector<50x16xf32>
    %c0_32 = arith.constant 0 : index
    %c0_33 = arith.constant 0 : index
    %36 = vector.load %arg3[%c0_32, %c0_33] : memref<1x16xf32, #tpu.memory_space<vmem>>, vector<1x16xf32>
    %37 = vector.broadcast %36 : vector<1x16xf32> to vector<50x16xf32>
    %38 = arith.addf %35, %37 : vector<50x16xf32>
    %c0_34 = arith.constant 0 : index
    %c0_35 = arith.constant 0 : index
    %39 = vector.load %arg4[%c0_34, %c0_35] : memref<50x16xf32, #tpu.memory_space<vmem>>, vector<50x16xf32>
    tpu.vector_store %arg4[%c0_34, %c0_35], %38 {strides = array<i32>} : memref<50x16xf32, #tpu.memory_space<vmem>>, vector<50x16xf32>,
    return
  }
}

</mosaic_0001>

<bundles_post_ra>
// kernel: tpu_custom_call.1
= control target key start
LH: loop header
LB: loop body
LE: loop exit
PB: predicated region body
PF: predicated region fallthrough
CT: control target
= control target key end

     0   :  { %vm48_vm0 = vcmask 1041408   ;;  %v1736_v0 = vmov 0.0|0.0   ;;  %vm1737_vm1 = vmmov 1   ;;  %vm1738_vm3 = vmmov 0   ;;  %s2291_s2 = inlined_call_operand.vmem [shape: f32[10,16], index: 2, kind: input, shape index: {}]   ;;  %s2292_s0 = inlined_call_operand.vmem [shape: f32[4,50,10], index: 0, kind: input, shape index: {}]   ;;  %s2293_s1 = inlined_call_operand.vmem [shape: f32[5,50,10], index: 1, kind: input, shape index: {}]   ;;  %s2294_s3 = inlined_call_operand.vmem [shape: f32[1,16], index: 3, kind: input, shape index: {}]   ;;  %s2295_s4 = inlined_call_operand.vmem [shape: f32[50,16], index: 4, kind: output, shape index: {}]  }
   0x1   :  { %1694 = vmatprep.subr.bf16.mxu0 %v1736_v0  ;;  %1730 = vmatprep.subr.bf16.mxu1 %v1736_v0  ;;  %v17_v1 = vld [vmem:[%s2291_s2] sm:$0xff]  ;;  %v18_v2 = vld [vmem:[%s2291_s2 + $0x8] sm:$0x3]  ;;  %vm1773_vm2 = vmpackc.low %vm48_vm0, %vm1737_vm1  ;;  %v1739_v5 = vmov 0.0   ;;  %vm26_vm4 = vcmask 80896   ;;  %vm1253_vm5 = vcmask 130048  }
   0x2   :  { %v1777_v4 = vpack.c.bf16 %v18_v2, %v17_v1  ;;  %1473 = vmatprep.mubr.msk.f32.mxu0 %vm1738_vm3, %v1739_v5  ;;  %1485 = vmatprep.mubr.msk.f32.mxu1 %vm1738_vm3, %v1739_v5  ;;  %v19_v6 = vld [vmem:[%s2292_s0] sm:$0xff]  ;;  %v20_v8 = vld [vmem:[%s2292_s0 + $0x8] sm:$0xff]  ;;  %v21_v10 = vld [vmem:[%s2292_s0 + $0x10] sm:$0xff]  ;;  %vm1260_vm6 = vcmask 123904  }
   0x3   :  { %v23_v7 = vld [vmem:[%s2292_s0 + $0x20] sm:$0xff]  ;;  %v24_v9 = vld [vmem:[%s2292_s0 + $0x28] sm:$0xff]  ;;  %v25_v11 = vld [vmem:[%s2292_s0 + $0x30] sm:$0x3] }
   0x4   :  { %1697 = vmatpush3.bf16.msk.msra.mxu0 %vm1773_vm2, %v1777_v4  ;;  %1731 = vmatpush3.bf16.msk.msra.mxu1 %vm1773_vm2, %v1777_v4  ;;  %v22_v12 = vld [vmem:[%s2292_s0 + $0x18] sm:$0xff]  ;;  %v1275_v14 = vld [vmem:[%s2292_s0 + $0x40] sm:$0xff]  ;;  %v1289_v15 = vld [vmem:[%s2292_s0 + $0x70] sm:$0xff] }
   0x5   :  { %1702 = vmatprep.subr.bf16.mxu0 %v1736_v0  ;;  %1698 = vmatprep.subr.bf16.mxu1 %v1736_v0  ;;  %v1274_v13 = vld [vmem:[%s2292_s0 + $0x38] sm:$0xff]  ;;  %v1276_v16 = vld [vmem:[%s2292_s0 + $0x48] sm:$0xff]  ;;  %v1277_v18 = vld [vmem:[%s2292_s0 + $0x50] sm:$0xff] }
   0x6   :  { %v1290_v17 = vld [vmem:[%s2292_s0 + $0x78] sm:$0xff]  ;;  %v1291_v19 = vld [vmem:[%s2292_s0 + $0x80] sm:$0xff]  ;;  %v1292_v21 = vld [vmem:[%s2292_s0 + $0x88] sm:$0xff] }
   0x7   :  { %1474 = vmatmul.mubr.msk.f32.vlgmr.msra.gmra.mrb[0].mxu0 %vm26_vm4, %v19_v6  ;;  %1486 = vmatmul.mubr.msk.f32.vlgmr.msra.gmra.mrb[0].mxu1 %vm26_vm4, %v23_v7  ;;  %v1278_v20 = vld [vmem:[%s2292_s0 + $0x58] sm:$0xff]  ;;  %v1279_v22 = vld [vmem:[%s2292_s0 + $0x60] sm:$0xff]  ;;  %v1293_v23 = vld [vmem:[%s2292_s0 + $0x90] sm:$0xff] }
   0x8   :  { %1705 = vmatpush3.bf16.msk.msra.mxu0 %vm1773_vm2, %v1777_v4  ;;  %1476 = vmatprep.mubr.msk.f32.mxu0 %vm1738_vm3, %v1739_v5  ;;  %v1280_v24 = vld [vmem:[%s2292_s0 + $0x68] sm:$0x3]  ;;  %v1294_v25 = vld [vmem:[%s2292_s0 + $0x98] sm:$0xff]  ;;  %v1295_v26 = vld [vmem:[%s2292_s0 + $0xa0] sm:$0x3] }
   0x9   :  { %1488 = vmatprep.mubr.msk.f32.mxu1 %vm1738_vm3, %v1739_v5  ;;  %1701 = vmatpush3.bf16.msk.msra.mxu1 %vm1773_vm2, %v1777_v4  ;;  %v1304_v27 = vld [vmem:[%s2292_s0 + $0xa8] sm:$0xff]  ;;  %v1305_v28 = vld [vmem:[%s2292_s0 + $0xb0] sm:$0xff]  ;;  %v560_v29 = vld [vmem:[%s2293_s1] sm:$0xff] }
   0xa   :  { %1706 = vmatprep.subr.bf16.mxu1 %v1736_v0  ;;  %1710 = vmatprep.subr.bf16.mxu0 %v1736_v0  ;;  %v1306_v30 = vld [vmem:[%s2292_s0 + $0xb8] sm:$0xff]  ;;  %v561_v31 = vld [vmem:[%s2293_s1 + $0x8] sm:$0xff]  ;;  %v1307_v32 = vld [vmem:[%s2292_s0 + $0xc0] sm:$0xff] }
   0xb   :  { %1477 = vmatmul.mubr.msk.f32.gmra.mrb[2].mxu0 %vm26_vm4, %v20_v8  ;;  %1489 = vmatmul.mubr.msk.f32.gmra.mrb[2].mxu1 %vm26_vm4, %v24_v9  ;;  %v562_v33 = vld [vmem:[%s2293_s1 + $0x10] sm:$0xff]  ;;  %v1308_v34 = vld [vmem:[%s2292_s0 + $0xc8] sm:$0xff]  ;;  %v563_v35 = vld [vmem:[%s2293_s1 + $0x18] sm:$0xff] }
   0xc   :  { %1479 = vmatprep.mubr.msk.f32.mxu0 %vm1738_vm3, %v1739_v5  ;;  %1491 = vmatprep.mubr.msk.f32.mxu1 %vm1738_vm3, %v1739_v5  ;;  %v1309_v36 = vld [vmem:[%s2292_s0 + $0xd0] sm:$0xff]  ;;  %v564_v37 = vld [vmem:[%s2293_s1 + $0x20] sm:$0xff]  ;;  %v1310_v38 = vld [vmem:[%s2292_s0 + $0xd8] sm:$0x3] }
   0xd   :  { %v565_v39 = vld [vmem:[%s2293_s1 + $0x28] sm:$0xff]  ;;  %v566_v40 = vld [vmem:[%s2293_s1 + $0x30] sm:$0x3]  ;;  %v1327_v41 = vld [vmem:[%s2293_s1 + $0x38] sm:$0xff] }
   0xe   :  { %v1328_v42 = vld [vmem:[%s2293_s1 + $0x40] sm:$0xff]  ;;  %v1342_v43 = vld [vmem:[%s2293_s1 + $0x70] sm:$0xff]  ;;  %v1329_v44 = vld [vmem:[%s2293_s1 + $0x48] sm:$0xff] }
   0xf   :  { %1480 = vmatmul.mubr.msk.f32.gmra.mrb[4].mxu0 %vm26_vm4, %v21_v10  ;;  %1492 = vmatmul.mubr.msk.f32.gmra.mrb[4].mxu1 %vm26_vm4, %v25_v11  ;;  %v1343_v45 = vld [vmem:[%s2293_s1 + $0x78] sm:$0xff]  ;;  %v1330_v46 = vld [vmem:[%s2293_s1 + $0x50] sm:$0xff]  ;;  %v1344_v47 = vld [vmem:[%s2293_s1 + $0x80] sm:$0xff] }
  0x10   :  { %1482 = vmatprep.mubr.msk.f32.mxu0 %vm1738_vm3, %v1739_v5  ;;  %1498 = vmatprep.mubr.msk.f32.mxu1 %vm1738_vm3, %v1739_v5  ;;  %v1331_v48 = vld [vmem:[%s2293_s1 + $0x58] sm:$0xff]  ;;  %v1345_v49 = vld [vmem:[%s2293_s1 + $0x88] sm:$0xff]  ;;  %v1332_v50 = vld [vmem:[%s2293_s1 + $0x60] sm:$0xff] }
  0x11   :  { %v1346_v51 = vld [vmem:[%s2293_s1 + $0x90] sm:$0xff]  ;;  %v1333_v52 = vld [vmem:[%s2293_s1 + $0x68] sm:$0x3]  ;;  %v1347_v53 = vld [vmem:[%s2293_s1 + $0x98] sm:$0xff] }
  0x12   :  { %v1348_v54 = vld [vmem:[%s2293_s1 + $0xa0] sm:$0x3]  ;;  %v1357_v55 = vld [vmem:[%s2293_s1 + $0xa8] sm:$0xff]  ;;  %v1358_v56 = vld [vmem:[%s2293_s1 + $0xb0] sm:$0xff] }
  0x13   :  { %1483 = vmatmul.mubr.msk.f32.gmra.mrb[6].mxu0 %vm26_vm4, %v22_v12  ;;  %1499 = vmatmul.mubr.msk.f32.vlgmr.msra.gmra.mrb[6].mxu1 %vm26_vm4, %v1274_v13  ;;  %v1372_v57 = vld [vmem:[%s2293_s1 + $0xe0] sm:$0xff]  ;;  %v1359_v58 = vld [vmem:[%s2293_s1 + $0xb8] sm:$0xff]  ;;  %v1373_v59 = vld [vmem:[%s2293_s1 + $0xe8] sm:$0xff] }
  0x14   :  { %1501 = vmatprep.mubr.msk.f32.mxu1 %vm1738_vm3, %v1739_v5  ;;  %1523 = vmatprep.mubr.msk.f32.mxu0 %vm1738_vm3, %v1739_v5  ;;  %v1360_v60 = vld [vmem:[%s2293_s1 + $0xc0] sm:$0xff]  ;;  %v1374_v61 = vld [vmem:[%s2293_s1 + $0xf0] sm:$0xff]  ;;  %v1361_v62 = vld [vmem:[%s2293_s1 + $0xc8] sm:$0xff] }
  0x15   :  { %1709 = vmatpush3.bf16.msk.msra.mxu1 %vm1773_vm2, %v1777_v4  ;;  %v1375_v63 = vld [vmem:[%s2293_s1 + $0xf8] sm:$0xff]  ;;  %v1376_v1 = vld [vmem:[%s2293_s1 + $0x100] sm:$0xff]  ;;  %v1377_v3 = vld [vmem:[%s2293_s1 + $0x108] sm:$0xff] }
  0x16   :  { %1714 = vmatprep.subr.bf16.mxu1 %v1736_v0  ;;  %v1363_v2 = vld [vmem:[%s2293_s1 + $0xd8] sm:$0x3] }
  0x17   :  { %1502 = vmatmul.mubr.msk.f32.gmra.mrb[8].mxu1 %vm26_vm4, %v1275_v14  ;;  %1524 = vmatmul.mubr.msk.f32.vlgmr.msra.gmra.mrb[8].mxu0 %vm26_vm4, %v1289_v15 }
  0x18   :  { %1713 = vmatpush3.bf16.msk.msra.mxu0 %vm1773_vm2, %v1777_v4  ;;  %1504 = vmatprep.mubr.msk.f32.mxu1 %vm1738_vm3, %v1739_v5 }
  0x19   :  { %1526 = vmatprep.mubr.msk.f32.mxu0 %vm1738_vm3, %v1739_v5  ;;  %1718 = vmatprep.subr.bf16.mxu0 %v1736_v0 }
  0x1b   :  { %1505 = vmatmul.mubr.msk.f32.gmra.mrb[10].mxu1 %vm26_vm4, %v1276_v16  ;;  %1527 = vmatmul.mubr.msk.f32.gmra.mrb[10].mxu0 %vm26_vm4, %v1290_v17 }
  0x1c   :  { %1507 = vmatprep.mubr.msk.f32.mxu1 %vm1738_vm3, %v1739_v5  ;;  %1529 = vmatprep.mubr.msk.f32.mxu0 %vm1738_vm3, %v1739_v5 }
  0x1f   :  { %1508 = vmatmul.mubr.msk.f32.gmra.mrb[12].mxu1 %vm26_vm4, %v1277_v18  ;;  %1530 = vmatmul.mubr.msk.f32.gmra.mrb[12].mxu0 %vm26_vm4, %v1291_v19 }
  0x20   :  { %1510 = vmatprep.mubr.msk.f32.mxu1 %vm1738_vm3, %v1739_v5  ;;  %1532 = vmatprep.mubr.msk.f32.mxu0 %vm1738_vm3, %v1739_v5 }
  0x23   :  { %1511 = vmatmul.mubr.msk.f32.gmra.mrb[14].mxu1 %vm26_vm4, %v1278_v20  ;;  %1533 = vmatmul.mubr.msk.f32.gmra.mrb[14].mxu0 %vm26_vm4, %v1292_v21 }
  0x24   :  { %1513 = vmatprep.mubr.msk.f32.mxu1 %vm1738_vm3, %v1739_v5  ;;  %1535 = vmatprep.mubr.msk.f32.mxu0 %vm1738_vm3, %v1739_v5 }
  0x27   :  { %1514 = vmatmul.mubr.msk.f32.gmra.mrb[16].mxu1 %vm26_vm4, %v1279_v22  ;;  %1536 = vmatmul.mubr.msk.f32.gmra.mrb[16].mxu0 %vm26_vm4, %v1293_v23 }
  0x28   :  { %1516 = vmatprep.mubr.msk.f32.mxu1 %vm1738_vm3, %v1739_v5  ;;  %1538 = vmatprep.mubr.msk.f32.mxu0 %vm1738_vm3, %v1739_v5 }
  0x2b   :  { %1517 = vmatmul.mubr.msk.f32.gmra.mrb[18].mxu1 %vm26_vm4, %v1280_v24  ;;  %1539 = vmatmul.mubr.msk.f32.gmra.mrb[18].mxu0 %vm26_vm4, %v1294_v25 }
  0x2c   :  { %1541 = vmatprep.mubr.msk.f32.mxu0 %vm1738_vm3, %v1739_v5  ;;  %1548 = vmatprep.mubr.msk.f32.mxu1 %vm1738_vm3, %v1739_v5 }
  0x2f   :  { %1542 = vmatmul.mubr.msk.f32.gmra.mrb[20].mxu0 %vm26_vm4, %v1295_v26  ;;  %1549 = vmatmul.mubr.msk.f32.vlgmr.msra.gmra.mrb[20].mxu1 %vm26_vm4, %v1304_v27 }
  0x30   :  { %1551 = vmatprep.mubr.msk.f32.mxu1 %vm1738_vm3, %v1739_v5  ;;  %1573 = vmatprep.mubr.msk.f32.mxu0 %vm1738_vm3, %v1739_v5 }
  0x31   :  { %1717 = vmatpush3.bf16.msk.msra.mxu1 %vm1773_vm2, %v1777_v4 }
  0x32   :  { %1722 = vmatprep.subr.bf16.mxu1 %v1736_v0 }
  0x33   :  { %1552 = vmatmul.mubr.msk.f32.gmra.mrb[22].mxu1 %vm26_vm4, %v1305_v28  ;;  %1574 = vmatmul.mubr.msk.f32.vlgmr.msra.gmra.mrb[22].mxu0 %vm26_vm4, %v560_v29 }
  0x34   :  { %1721 = vmatpush3.bf16.msk.msra.mxu0 %vm1773_vm2, %v1777_v4  ;;  %1554 = vmatprep.mubr.msk.f32.mxu1 %vm1738_vm3, %v1739_v5 }
  0x35   :  { %1576 = vmatprep.mubr.msk.f32.mxu0 %vm1738_vm3, %v1739_v5  ;;  %1726 = vmatprep.subr.bf16.mxu0 %v1736_v0  ;;  %v1362_v0 = vld [vmem:[%s2293_s1 + $0xd0] sm:$0xff] }
  0x37   :  { %1555 = vmatmul.mubr.msk.f32.gmra.mrb[24].mxu1 %vm26_vm4, %v1306_v30  ;;  %1577 = vmatmul.mubr.msk.f32.gmra.mrb[24].mxu0 %vm26_vm4, %v561_v31 }
  0x38   :  { %1557 = vmatprep.mubr.msk.f32.mxu1 %vm1738_vm3, %v1739_v5  ;;  %1579 = vmatprep.mubr.msk.f32.mxu0 %vm1738_vm3, %v1739_v5 }
  0x3b   :  { %1558 = vmatmul.mubr.msk.f32.gmra.mrb[26].mxu1 %vm26_vm4, %v1307_v32  ;;  %1580 = vmatmul.mubr.msk.f32.gmra.mrb[26].mxu0 %vm26_vm4, %v562_v33 }
  0x3c   :  { %1560 = vmatprep.mubr.msk.f32.mxu1 %vm1738_vm3, %v1739_v5  ;;  %1582 = vmatprep.mubr.msk.f32.mxu0 %vm1738_vm3, %v1739_v5 }
  0x3f   :  { %1561 = vmatmul.mubr.msk.f32.gmra.mrb[28].mxu1 %vm26_vm4, %v1308_v34  ;;  %1583 = vmatmul.mubr.msk.f32.gmra.mrb[28].mxu0 %vm26_vm4, %v563_v35 }
  0x40   :  { %1563 = vmatprep.mubr.msk.f32.mxu1 %vm1738_vm3, %v1739_v5  ;;  %1585 = vmatprep.mubr.msk.f32.mxu0 %vm1738_vm3, %v1739_v5 }
  0x43   :  { %1564 = vmatmul.mubr.msk.f32.gmra.mrb[30].mxu1 %vm26_vm4, %v1309_v36  ;;  %1586 = vmatmul.mubr.msk.f32.gmra.mrb[30].mxu0 %vm26_vm4, %v564_v37 }
  0x44   :  { %1566 = vmatprep.mubr.msk.f32.mxu1 %vm1738_vm3, %v1739_v5  ;;  %1588 = vmatprep.mubr.msk.f32.mxu0 %vm1738_vm3, %v1739_v5 }
  0x47   :  { %1567 = vmatmul.mubr.msk.f32.gmra.mrb[32].mxu1 %vm26_vm4, %v1310_v38  ;;  %1589 = vmatmul.mubr.msk.f32.gmra.mrb[32].mxu0 %vm26_vm4, %v565_v39 }
  0x48   :  { %1591 = vmatprep.mubr.msk.f32.mxu0 %vm1738_vm3, %v1739_v5  ;;  %1598 = vmatprep.mubr.msk.f32.mxu1 %vm1738_vm3, %v1739_v5 }
  0x4b   :  { %1592 = vmatmul.mubr.msk.f32.gmra.mrb[34].mxu0 %vm26_vm4, %v566_v40  ;;  %1599 = vmatmul.mubr.msk.f32.vlgmr.msra.gmra.mrb[34].mxu1 %vm26_vm4, %v1327_v41 }
  0x4c   :  { %1601 = vmatprep.mubr.msk.f32.mxu1 %vm1738_vm3, %v1739_v5  ;;  %1623 = vmatprep.mubr.msk.f32.mxu0 %vm1738_vm3, %v1739_v5 }
  0x4d   :  { %1725 = vmatpush3.bf16.msk.msra.mxu1 %vm1773_vm2, %v1777_v4 }
  0x4f   :  { %1602 = vmatmul.mubr.msk.f32.gmra.mrb[36].mxu1 %vm26_vm4, %v1328_v42  ;;  %1624 = vmatmul.mubr.msk.f32.vlgmr.msra.gmra.mrb[36].mxu0 %vm26_vm4, %v1342_v43 }
  0x50   :  { %1729 = vmatpush3.bf16.msk.msra.mxu0 %vm1773_vm2, %v1777_v4  ;;  %1604 = vmatprep.mubr.msk.f32.mxu1 %vm1738_vm3, %v1739_v5  ;;  %v1378_v4 = vld [vmem:[%s2293_s1 + $0x110] sm:$0x3] }
  0x51   :  { %1626 = vmatprep.mubr.msk.f32.mxu0 %vm1738_vm3, %v1739_v5 }
  0x53   :  { %1605 = vmatmul.mubr.msk.f32.gmra.mrb[38].mxu1 %vm26_vm4, %v1329_v44  ;;  %1627 = vmatmul.mubr.msk.f32.gmra.mrb[38].mxu0 %vm26_vm4, %v1343_v45 }
  0x54   :  { %1607 = vmatprep.mubr.msk.f32.mxu1 %vm1738_vm3, %v1739_v5  ;;  %1629 = vmatprep.mubr.msk.f32.mxu0 %vm1738_vm3, %v1739_v5 }
  0x57   :  { %1608 = vmatmul.mubr.msk.f32.gmra.mrb[40].mxu1 %vm26_vm4, %v1330_v46  ;;  %1630 = vmatmul.mubr.msk.f32.gmra.mrb[40].mxu0 %vm26_vm4, %v1344_v47 }
  0x58   :  { %1610 = vmatprep.mubr.msk.f32.mxu1 %vm1738_vm3, %v1739_v5  ;;  %1632 = vmatprep.mubr.msk.f32.mxu0 %vm1738_vm3, %v1739_v5 }
  0x5b   :  { %1611 = vmatmul.mubr.msk.f32.gmra.mrb[42].mxu1 %vm26_vm4, %v1331_v48  ;;  %1633 = vmatmul.mubr.msk.f32.gmra.mrb[42].mxu0 %vm26_vm4, %v1345_v49 }
  0x5c   :  { %1613 = vmatprep.mubr.msk.f32.mxu1 %vm1738_vm3, %v1739_v5  ;;  %1635 = vmatprep.mubr.msk.f32.mxu0 %vm1738_vm3, %v1739_v5 }
  0x5f   :  { %1614 = vmatmul.mubr.msk.f32.gmra.mrb[44].mxu1 %vm26_vm4, %v1332_v50  ;;  %1636 = vmatmul.mubr.msk.f32.gmra.mrb[44].mxu0 %vm26_vm4, %v1346_v51 }
  0x60   :  { %1616 = vmatprep.mubr.msk.f32.mxu1 %vm1738_vm3, %v1739_v5  ;;  %1638 = vmatprep.mubr.msk.f32.mxu0 %vm1738_vm3, %v1739_v5 }
  0x63   :  { %1617 = vmatmul.mubr.msk.f32.gmra.mrb[46].mxu1 %vm26_vm4, %v1333_v52  ;;  %1639 = vmatmul.mubr.msk.f32.gmra.mrb[46].mxu0 %vm26_vm4, %v1347_v53 }
  0x64   :  { %1641 = vmatprep.mubr.msk.f32.mxu0 %vm1738_vm3, %v1739_v5  ;;  %1648 = vmatprep.mubr.msk.f32.mxu1 %vm1738_vm3, %v1739_v5 }
  0x67   :  { %1642 = vmatmul.mubr.msk.f32.gmra.mrb[48].mxu0 %vm26_vm4, %v1348_v54  ;;  %1649 = vmatmul.mubr.msk.f32.vlgmr.msra.gmra.mrb[48].mxu1 %vm26_vm4, %v1357_v55 }
  0x68   :  { %1651 = vmatprep.mubr.msk.f32.mxu1 %vm1738_vm3, %v1739_v5  ;;  %1673 = vmatprep.mubr.msk.f32.mxu0 %vm1738_vm3, %v1739_v5 }
  0x6b   :  { %1652 = vmatmul.mubr.msk.f32.gmra.mrb[50].mxu1 %vm26_vm4, %v1358_v56  ;;  %1674 = vmatmul.mubr.msk.f32.vlgmr.msra.gmra.mrb[50].mxu0 %vm26_vm4, %v1372_v57 }
  0x6c   :  { %1654 = vmatprep.mubr.msk.f32.mxu1 %vm1738_vm3, %v1739_v5  ;;  %1676 = vmatprep.mubr.msk.f32.mxu0 %vm1738_vm3, %v1739_v5 }
  0x6f   :  { %1655 = vmatmul.mubr.msk.f32.gmra.mrb[52].mxu1 %vm26_vm4, %v1359_v58  ;;  %1677 = vmatmul.mubr.msk.f32.gmra.mrb[52].mxu0 %vm26_vm4, %v1373_v59 }
  0x70   :  { %1657 = vmatprep.mubr.msk.f32.mxu1 %vm1738_vm3, %v1739_v5  ;;  %1679 = vmatprep.mubr.msk.f32.mxu0 %vm1738_vm3, %v1739_v5 }
  0x73   :  { %1658 = vmatmul.mubr.msk.f32.gmra.mrb[54].mxu1 %vm26_vm4, %v1360_v60  ;;  %1680 = vmatmul.mubr.msk.f32.gmra.mrb[54].mxu0 %vm26_vm4, %v1374_v61 }
  0x74   :  { %1660 = vmatprep.mubr.msk.f32.mxu1 %vm1738_vm3, %v1739_v5  ;;  %1682 = vmatprep.mubr.msk.f32.mxu0 %vm1738_vm3, %v1739_v5 }
  0x77   :  { %1661 = vmatmul.mubr.msk.f32.gmra.mrb[56].mxu1 %vm26_vm4, %v1361_v62  ;;  %1683 = vmatmul.mubr.msk.f32.gmra.mrb[56].mxu0 %vm26_vm4, %v1375_v63 }
  0x78   :  { %1663 = vmatprep.mubr.msk.f32.mxu1 %vm1738_vm3, %v1739_v5  ;;  %1685 = vmatprep.mubr.msk.f32.mxu0 %vm1738_vm3, %v1739_v5 }
  0x7b   :  { %1664 = vmatmul.mubr.msk.f32.gmra.mrb[58].mxu1 %vm26_vm4, %v1362_v0  ;;  %1686 = vmatmul.mubr.msk.f32.gmra.mrb[58].mxu0 %vm26_vm4, %v1376_v1 }
  0x7c   :  { %1666 = vmatprep.mubr.msk.f32.mxu1 %vm1738_vm3, %v1739_v5  ;;  %1688 = vmatprep.mubr.msk.f32.mxu0 %vm1738_vm3, %v1739_v5 }
  0x7f   :  { %1667 = vmatmul.mubr.msk.f32.gmra.mrb[60].mxu1 %vm26_vm4, %v1363_v2  ;;  %1689 = vmatmul.mubr.msk.f32.gmra.mrb[60].mxu0 %vm26_vm4, %v1377_v3 }
  0x80   :  { %1691 = vmatprep.mubr.msk.f32.mxu0 %vm1738_vm3, %v1739_v5 }
  0x83   :  { %1692 = vmatmul.mubr.msk.f32.gmra.mrb[62].mxu0 %vm26_vm4, %v1378_v4 }
  0xda   :  { %v118_v6 = vpop.f32.mrb[0].mxu0  ;;  %v138_v7 = vpop.f32.mrb[0].mxu1 }
  0xdb   :  { %v1475_v8 = vpop.f32.mrb[1].mxu0  ;;  %v1487_v9 = vpop.f32.mrb[1].mxu1 }
  0xde   :  { %v123_v10 = vpop.f32.mrb[2].mxu0  ;;  %v143_v11 = vpop.f32.mrb[2].mxu1 }
  0xdf   :  { %v1478_v12 = vpop.f32.mrb[3].mxu0  ;;  %v1490_v13 = vpop.f32.mrb[3].mxu1 }
  0xe2   :  { %v128_v14 = vpop.f32.mrb[4].mxu0  ;;  %v148_v15 = vpop.f32.mrb[4].mxu1 }
  0xe3   :  { %v1481_v16 = vpop.f32.mrb[5].mxu0  ;;  %v1493_v17 = vpop.f32.mrb[5].mxu1 }
  0xe6   :  { %v133_v18 = vpop.f32.mrb[6].mxu0  ;;  %v247_v5 = vpop.f32.mrb[6].mxu1 }
  0xe7   :  { %v281_v19 = vmax.f32 %v118_v6, %v247_v5  ;;  %v1484_v20 = vpop.f32.mrb[7].mxu0  ;;  %v1500_v21 = vpop.f32.mrb[7].mxu1 }
  0xea   :  { %v252_v22 = vpop.f32.mrb[8].mxu1  ;;  %v383_v23 = vpop.f32.mrb[8].mxu0 }
  0xeb   :  { %v282_v24 = vmax.f32 %v123_v10, %v252_v22  ;;  %v2195_v25 = vmax.f32 %v281_v19, %v383_v23  ;;  %v1525_v26 = vpop.f32.mrb[9].mxu0  ;;  %v1503_v27 = vpop.f32.mrb[9].mxu1 }
  0xee   :  { %v257_v28 = vpop.f32.mrb[10].mxu1  ;;  %v388_v29 = vpop.f32.mrb[10].mxu0 }
  0xef   :  { %v283_v30 = vmax.f32 %v128_v14, %v257_v28  ;;  %v2197_v31 = vmax.f32 %v282_v24, %v388_v29  ;;  %v1528_v32 = vpop.f32.mrb[11].mxu0  ;;  %v1506_v33 = vpop.f32.mrb[11].mxu1 }
  0xf2   :  { %v262_v34 = vpop.f32.mrb[12].mxu1  ;;  %v393_v35 = vpop.f32.mrb[12].mxu0 }
  0xf3   :  { %v284_v36 = vmax.f32 %v133_v18, %v262_v34  ;;  %v2199_v37 = vmax.f32 %v283_v30, %v393_v35  ;;  %v1531_v38 = vpop.f32.mrb[13].mxu0  ;;  %v1509_v39 = vpop.f32.mrb[13].mxu1 }
  0xf6   :  { %v267_v40 = vpop.f32.mrb[14].mxu1  ;;  %v398_v41 = vpop.f32.mrb[14].mxu0 }
  0xf7   :  { %v285_v42 = vmax.f32 %v138_v7, %v267_v40  ;;  %v2201_v43 = vmax.f32 %v284_v36, %v398_v41  ;;  %v1534_v44 = vpop.f32.mrb[15].mxu0  ;;  %v1512_v45 = vpop.f32.mrb[15].mxu1 }
  0xfa   :  { %v272_v46 = vpop.f32.mrb[16].mxu1  ;;  %v403_v47 = vpop.f32.mrb[16].mxu0 }
  0xfb   :  { %v286_v48 = vmax.f32 %v143_v11, %v272_v46  ;;  %v2203_v49 = vmax.f32 %v285_v42, %v403_v47  ;;  %v1537_v50 = vpop.f32.mrb[17].mxu0  ;;  %v1515_v51 = vpop.f32.mrb[17].mxu1 }
  0xfe   :  { %v277_v52 = vpop.f32.mrb[18].mxu1  ;;  %v408_v53 = vpop.f32.mrb[18].mxu0 }
  0xff   :  { %v287_v54 = vmax.f32 %v148_v15, %v277_v52  ;;  %v2205_v55 = vmax.f32 %v286_v48, %v408_v53  ;;  %v1540_v56 = vpop.f32.mrb[19].mxu0  ;;  %v1518_v57 = vpop.f32.mrb[19].mxu1 }
 0x102   :  { %v413_v58 = vpop.f32.mrb[20].mxu0  ;;  %v2207_v59 = vpop.f32.mrb[20].mxu1 }
 0x103   :  { %v2209_v60 = vmax.f32 %v287_v54, %v413_v58  ;;  %v553_v61 = vmax.f32 %v2195_v25, %v2207_v59  ;;  %v1543_v62 = vpop.f32.mrb[21].mxu0  ;;  %v1550_v63 = vpop.f32.mrb[21].mxu1 }
 0x106   :  { %v2213_v0 = vpop.f32.mrb[22].mxu1  ;;  %v654_v1 = vpop.f32.mrb[22].mxu0 }
 0x107   :  { %v554_v2 = vmax.f32 %v2197_v31, %v2213_v0  ;;  %v1575_v3 = vpop.f32.mrb[23].mxu0  ;;  %v1553_v4 = vpop.f32.mrb[23].mxu1 }
 0x10a   :  { %v2217_v6 = vpop.f32.mrb[24].mxu1  ;;  %v659_v7 = vpop.f32.mrb[24].mxu0 }
 0x10b   :  { %v555_v8 = vmax.f32 %v2199_v37, %v2217_v6  ;;  %v1578_v9 = vpop.f32.mrb[25].mxu0  ;;  %v1556_v10 = vpop.f32.mrb[25].mxu1 }
 0x10e   :  { %v2221_v11 = vpop.f32.mrb[26].mxu1  ;;  %v664_v12 = vpop.f32.mrb[26].mxu0 }
 0x10f   :  { %v556_v13 = vmax.f32 %v2201_v43, %v2221_v11  ;;  %v1581_v14 = vpop.f32.mrb[27].mxu0  ;;  %v1559_v15 = vpop.f32.mrb[27].mxu1 }
 0x112   :  { %v2225_v16 = vpop.f32.mrb[28].mxu1  ;;  %v669_v17 = vpop.f32.mrb[28].mxu0 }
 0x113   :  { %v557_v18 = vmax.f32 %v2203_v49, %v2225_v16  ;;  %v1584_v5 = vpop.f32.mrb[29].mxu0  ;;  %v1562_v19 = vpop.f32.mrb[29].mxu1 }
 0x116   :  { %v2229_v20 = vpop.f32.mrb[30].mxu1  ;;  %v674_v21 = vpop.f32.mrb[30].mxu0 }
 0x117   :  { %v558_v22 = vmax.f32 %v2205_v55, %v2229_v20  ;;  %v1587_v23 = vpop.f32.mrb[31].mxu0  ;;  %v1565_v24 = vpop.f32.mrb[31].mxu1 }
 0x11a   :  { %v2233_v26 = vpop.f32.mrb[32].mxu1  ;;  %v679_v27 = vpop.f32.mrb[32].mxu0 }
 0x11b   :  { %v559_v28 = vmax.f32 %v2209_v60, %v2233_v26  ;;  %v1590_v29 = vpop.f32.mrb[33].mxu0  ;;  %v1568_v30 = vpop.f32.mrb[33].mxu1 }
 0x11e   :  { %v684_v32 = vpop.f32.mrb[34].mxu0  ;;  %v783_v33 = vpop.f32.mrb[34].mxu1 }
 0x11f   :  { %v817_v34 = vmax.f32 %v654_v1, %v783_v33  ;;  %v1593_v35 = vpop.f32.mrb[35].mxu0  ;;  %v1600_v36 = vpop.f32.mrb[35].mxu1 }
 0x122   :  { %v788_v38 = vpop.f32.mrb[36].mxu1  ;;  %v919_v39 = vpop.f32.mrb[36].mxu0 }
 0x123   :  { %v818_v40 = vmax.f32 %v659_v7, %v788_v38  ;;  %v953_v41 = vmax.f32 %v817_v34, %v919_v39  ;;  %v1625_v42 = vpop.f32.mrb[37].mxu0  ;;  %v1603_v44 = vpop.f32.mrb[37].mxu1 }
 0x126   :  { %v793_v45 = vpop.f32.mrb[38].mxu1  ;;  %v924_v46 = vpop.f32.mrb[38].mxu0 }
 0x127   :  { %v819_v47 = vmax.f32 %v664_v12, %v793_v45  ;;  %v954_v48 = vmax.f32 %v818_v40, %v924_v46  ;;  %v1628_v50 = vpop.f32.mrb[39].mxu0  ;;  %v1606_v51 = vpop.f32.mrb[39].mxu1 }
 0x12a   :  { %v798_v52 = vpop.f32.mrb[40].mxu1  ;;  %v929_v53 = vpop.f32.mrb[40].mxu0 }
 0x12b   :  { %v820_v54 = vmax.f32 %v669_v17, %v798_v52  ;;  %v955_v56 = vmax.f32 %v819_v47, %v929_v53  ;;  %v1631_v57 = vpop.f32.mrb[41].mxu0  ;;  %v1609_v58 = vpop.f32.mrb[41].mxu1 }
 0x12e   :  { %v803_v62 = vpop.f32.mrb[42].mxu1  ;;  %v934_v63 = vpop.f32.mrb[42].mxu0 }
 0x12f   :  { %v821_v1 = vmax.f32 %v674_v21, %v803_v62  ;;  %v956_v3 = vmax.f32 %v820_v54, %v934_v63  ;;  %v1634_v4 = vpop.f32.mrb[43].mxu0  ;;  %v1612_v7 = vpop.f32.mrb[43].mxu1 }
 0x132   :  { %v808_v9 = vpop.f32.mrb[44].mxu1  ;;  %v939_v10 = vpop.f32.mrb[44].mxu0 }
 0x133   :  { %v822_v14 = vmax.f32 %v679_v27, %v808_v9  ;;  %v957_v15 = vmax.f32 %v821_v1, %v939_v10  ;;  %v1637_v12 = vpop.f32.mrb[45].mxu0  ;;  %v1615_v5 = vpop.f32.mrb[45].mxu1 }
 0x136   :  { %v813_v19 = vpop.f32.mrb[46].mxu1  ;;  %v944_v23 = vpop.f32.mrb[46].mxu0 }
 0x137   :  { %v823_v24 = vmax.f32 %v684_v32, %v813_v19  ;;  %v958_v29 = vmax.f32 %v822_v14, %v944_v23  ;;  %v1640_v17 = vpop.f32.mrb[47].mxu0  ;;  %v1618_v30 = vpop.f32.mrb[47].mxu1  ;;  %v1387_v32 = vld [vmem:[%s2294_s3] ss:$0 sm:$0xff] }
 0x13a   :  { %v949_v33 = vpop.f32.mrb[48].mxu0  ;;  %v1055_v34 = vpop.f32.mrb[48].mxu1 }
 0x13b   :  { %v2237_v35 = vmax.f32 %v823_v24, %v949_v33  ;;  %v1089_v21 = vmax.f32 %v953_v41, %v1055_v34  ;;  %v1643_v36 = vpop.f32.mrb[49].mxu0  ;;  %v1650_v38 = vpop.f32.mrb[49].mxu1 }
 0x13e   :  { %v1060_v39 = vpop.f32.mrb[50].mxu1  ;;  %v1191_v40 = vpop.f32.mrb[50].mxu0 }
 0x13f   :  { %v1090_v42 = vmax.f32 %v954_v48, %v1060_v39  ;;  %v1225_v27 = vmax.f32 %v1089_v21, %v1191_v40  ;;  %v1675_v44 = vpop.f32.mrb[51].mxu0  ;;  %v1653_v45 = vpop.f32.mrb[51].mxu1 }
 0x141   :  { %v1232_v46 = vadd.f32 %v1225_v27, %v553_v61 }
 0x142   :  { %v1065_v47 = vpop.f32.mrb[52].mxu1  ;;  %v1196_v50 = vpop.f32.mrb[52].mxu0 }
 0x143   :  { %v1246_v41 = vadd.f32 %v1387_v32, %v1232_v46  ;;  %v1091_v51 = vmax.f32 %v955_v56, %v1065_v47  ;;  %v1226_v52 = vmax.f32 %v1090_v42, %v1196_v50  ;;  %v1678_v53 = vpop.f32.mrb[53].mxu0  ;;  %v1656_v54 = vpop.f32.mrb[53].mxu1 }
 0x145   :  { %1254 = vst.msk [vmem:[%s2295_s4] sm:$0xff] %vm1253_vm5, %v1246_v41  ;;  %v1233_v48 = vadd.f32 %v1226_v52, %v554_v2 }
 0x146   :  { %v1070_v57 = vpop.f32.mrb[54].mxu1  ;;  %v1201_v25 = vpop.f32.mrb[54].mxu0 }
 0x147   :  { %v1247_v59 = vadd.f32 %v1387_v32, %v1233_v48  ;;  %v1092_v61 = vmax.f32 %v956_v3, %v1070_v57  ;;  %v1227_v58 = vmax.f32 %v1091_v51, %v1201_v25  ;;  %v1681_v62 = vpop.f32.mrb[55].mxu0  ;;  %v1659_v63 = vpop.f32.mrb[55].mxu1 }
 0x149   :  { %1255 = vst.msk [vmem:[%s2295_s4 + $0x8] sm:$0xff] %vm1253_vm5, %v1247_v59  ;;  %v1234_v56 = vadd.f32 %v1227_v58, %v555_v8 }
 0x14a   :  { %v1075_v1 = vpop.f32.mrb[56].mxu1  ;;  %v1206_v4 = vpop.f32.mrb[56].mxu0 }
 0x14b   :  { %v1248_v31 = vadd.f32 %v1387_v32, %v1234_v56  ;;  %v1093_v0 = vmax.f32 %v957_v15, %v1075_v1  ;;  %v1228_v2 = vmax.f32 %v1092_v61, %v1206_v4  ;;  %v1684_v7 = vpop.f32.mrb[57].mxu0  ;;  %v1662_v9 = vpop.f32.mrb[57].mxu1 }
 0x14d   :  { %1256 = vst.msk [vmem:[%s2295_s4 + $0x10] sm:$0xff] %vm1253_vm5, %v1248_v31  ;;  %v1235_v3 = vadd.f32 %v1228_v2, %v556_v13 }
 0x14e   :  { %v1080_v10 = vpop.f32.mrb[58].mxu1  ;;  %v1211_v14 = vpop.f32.mrb[58].mxu0 }
 0x14f   :  { %v1249_v37 = vadd.f32 %v1387_v32, %v1235_v3  ;;  %v1094_v6 = vmax.f32 %v958_v29, %v1080_v10  ;;  %v1229_v8 = vmax.f32 %v1093_v0, %v1211_v14  ;;  %v1687_v12 = vpop.f32.mrb[59].mxu0  ;;  %v1665_v5 = vpop.f32.mrb[59].mxu1 }
 0x151   :  { %1257 = vst.msk [vmem:[%s2295_s4 + $0x18] sm:$0xff] %vm1253_vm5, %v1249_v37  ;;  %v1236_v15 = vadd.f32 %v1229_v8, %v557_v18 }
 0x152   :  { %v1085_v19 = vpop.f32.mrb[60].mxu1  ;;  %v1216_v23 = vpop.f32.mrb[60].mxu0 }
 0x153   :  { %v1250_v43 = vadd.f32 %v1387_v32, %v1236_v15  ;;  %v1095_v11 = vmax.f32 %v2237_v35, %v1085_v19  ;;  %v1230_v13 = vmax.f32 %v1094_v6, %v1216_v23  ;;  %v1690_v24 = vpop.f32.mrb[61].mxu0  ;;  %v1668_v29 = vpop.f32.mrb[61].mxu1 }
 0x155   :  { %1258 = vst.msk [vmem:[%s2295_s4 + $0x20] sm:$0xff] %vm1253_vm5, %v1250_v43  ;;  %v1237_v17 = vadd.f32 %v1230_v13, %v558_v22 }
 0x156   :  { %v1221_v30 = vpop.f32.mrb[62].mxu0 }
 0x157   :  { %v1251_v49 = vadd.f32 %v1387_v32, %v1237_v17  ;;  %v1231_v16 = vmax.f32 %v1095_v11, %v1221_v30  ;;  %v1693_v18 = vpop.f32.mrb[63].mxu0 }
 0x159   :  { %1259 = vst.msk [vmem:[%s2295_s4 + $0x28] sm:$0xff] %vm1253_vm5, %v1251_v49  ;;  %v1238_v33 = vadd.f32 %v1231_v16, %v559_v28 }
 0x15b   :  { %v1252_v34 = vadd.f32 %v1387_v32, %v1238_v33 }
 0x15d   :  { %1261 = vst.msk [vmem:[%s2295_s4 + $0x30] sm:$0x3] %vm1260_vm6, %v1252_v34 }

</bundles_post_ra>
